<compile_context>
chip_gen: v6e
topology: v6e:2x2x1
jax: 0.10.0
libtpu: 0.0.40
codegen_flags: <defaults>
</compile_context>

<pallas_src>
import jax
import jax.numpy as jnp
from jax import lax
from jax.experimental import pallas as pl
from jax.experimental.pallas import tpu as pltpu


def _make_resblock_kernel(H):
    """H (image height) is baked in at trace time for the per-image row masks."""

    def kernel(x_ref, w1id_ref, m2p_ref, m2c_ref, m2n_ref, b1_ref, b2_ref, o_ref):
        # x_ref   : (Bblk*H, 3*W*Cin) bf16  lanes = [row-tap0 | row-tap1 | row-tap2]
        # w1id_ref: (3*W*Cin, W*Ch + W*Cf) bf16  [conv1 banded taps | id 1x1 (center rows)]
        # m2p/c/n : (W*Ch, W*Cf) bf16       conv2 banded row taps kh = 0 / 1 / 2
        # b1_ref  : (1, W*Ch) f32           conv1 folded-BN bias, tiled over W
        # b2_ref  : (1, W*Cf) f32           conv2 + idconv folded-BN bias, tiled over W
        # o_ref   : (Bblk*H, W*Cf) f32      lane-dense output slab
        x = x_ref[...]                                   # (BH, 3*W*Cin) bf16
        BH = x.shape[0]
        WCh = m2c_ref.shape[0]

        # --- MXU pass 1: conv1 (3 row taps K-concat) + identity 1x1 (N-concat)
        fused = jnp.dot(x, w1id_ref[...], preferred_element_type=jnp.float32)
        h1 = jnp.maximum(fused[:, :WCh] + b1_ref[...], 0.0)     # (BH, W*Ch) f32
        acc2 = fused[:, WCh:]                                    # identity branch, f32

        # Per-image row index for halo masking (no general modulo needed when H
        # is a power of two; fall back to rem otherwise).
        row = lax.broadcasted_iota(jnp.int32, (BH, WCh), 0)
        if H & (H - 1) == 0:
            rin = jnp.bitwise_and(row, H - 1)
        else:
            rin = lax.rem(row, H)

        zero = jnp.zeros_like(h1)
        # Shifted views of h1 via XLU sublane rolls; the one-row zero masks
        # cancel the circular wrap AND the inter-image boundaries inside the
        # batched block, so no VMEM scratch / halo rows are needed.
        h1_prev = jnp.where(rin == 0, zero, pltpu.roll(h1, shift=1, axis=0))
        h1_next = jnp.where(rin == H - 1, zero, pltpu.roll(h1, shift=BH - 1, axis=0))

        bf = x.dtype  # bf16 only at MXU operands; elementwise math stays f32 (v5e-safe)
        acc2 = acc2 + jnp.dot(h1.astype(bf), m2c_ref[...],
                              preferred_element_type=jnp.float32)
        acc2 = acc2 + jnp.dot(h1_prev.astype(bf), m2p_ref[...],
                              preferred_element_type=jnp.float32)
        acc2 = acc2 + jnp.dot(h1_next.astype(bf), m2n_ref[...],
                              preferred_element_type=jnp.float32)

        # single fused bias add + final ReLU; full unmasked 128-lane store
        o_ref[...] = jnp.maximum(acc2 + b2_ref[...], 0.0).astype(o_ref.dtype)

    return kernel


def _band_taps(w, W):
    """w: (3, 3, Ci, Co) HWIO conv weights -> list of 3 (W*Ci, W*Co) banded matrices.

    tap[kh][j*Ci+ci, jo*Co+co] = w[kh, j-jo+1, ci, co] when |j-jo| <= 1, else 0,
    so a lane-dense row slab (M, W*Ci) @ tap[kh] applies row-tap kh of the 3x3
    conv with the width-direction SAME zero padding handled implicitly.
    """
    Ci, Co = w.shape[2], w.shape[3]
    taps = []
    for kh in range(3):
        m = jnp.zeros((W * Ci, W * Co), w.dtype)
        for kw in range(3):
            m = m + jnp.kron(jnp.eye(W, k=-(kw - 1), dtype=w.dtype), w[kh, kw])
        taps.append(m)
    return taps


@jax.jit
def resblock_pallas(x_nhwc, w1_f, b1_f, w2_f, b2_f, wid_f, bid_f):
    B, H, W, Cin = x_nhwc.shape
    Ch = w1_f.shape[3]
    Cf = w2_f.shape[3]
    WCin, WCh, WCf = W * Cin, W * Ch, W * Cf
    cdt = jnp.bfloat16

    # Lane-dense layout claims (unmasked 128-lane stores, dense accumulators)
    # require W*C to be an exact multiple of 128.
    assert WCh % 128 == 0 and WCf % 128 == 0, "need W*Ch and W*Cf % 128 == 0"

    # Batch several images per grid step so the dot M-dim approaches 128+.
    Bblk = B if B <= 8 else 8
    assert B % Bblk == 0, "batch must be divisible by the per-step image block"
    BH = Bblk * H
    assert BH % 8 == 0

    # Lane-dense, row-tap-concatenated input: (B*H, 3*W*Cin).  Row halo (SAME
    # padding in height) is applied per image here, so the kernel never slices
    # across sublanes.
    x_flat = x_nhwc.reshape(B, H, WCin)
    xp = jnp.pad(x_flat, ((0, 0), (1, 1), (0, 0)))
    x_cat = jnp.concatenate([xp[:, kh:kh + H, :] for kh in range(3)], axis=-1)
    x_cat = x_cat.reshape(B * H, 3 * WCin).astype(cdt)

    # conv1: three banded row-tap matrices stacked along K; identity 1x1
    # (BN folded) stacked along N, applied only to the center-tap lane group.
    m1cat = jnp.concatenate(_band_taps(w1_f, W), axis=0)          # (3*W*Cin, W*Ch)
    id_blk = jnp.kron(jnp.eye(W, dtype=wid_f.dtype), wid_f)       # (W*Cin, W*Cf)
    w_id = jnp.concatenate(
        [jnp.zeros((WCin, WCf), id_blk.dtype), id_blk,
         jnp.zeros((WCin, WCf), id_blk.dtype)], axis=0)           # (3*W*Cin, W*Cf)
    w1id = jnp.concatenate([m1cat, w_id], axis=1).astype(cdt)     # (3*W*Cin, W*Ch+W*Cf)

    m2p, m2c, m2n = (t.astype(cdt) for t in _band_taps(w2_f, W))  # (W*Ch, W*Cf) x3

    b1w = jnp.tile(b1_f, (1, W)).astype(jnp.float32)              # (1, W*Ch)
    b2w = jnp.tile(b2_f + bid_f, (1, W)).astype(jnp.float32)      # (1, W*Cf)

    out = pl.pallas_call(
        _make_resblock_kernel(H),
        out_shape=jax.ShapeDtypeStruct((B * H, WCf), jnp.float32),
        grid_spec=pltpu.PrefetchScalarGridSpec(
            num_scalar_prefetch=0,
            grid=(B // Bblk,),
            in_specs=[
                pl.BlockSpec((BH, 3 * WCin), lambda b: (b, 0)),
                pl.BlockSpec((3 * WCin, WCh + WCf), lambda b: (0, 0)),
                pl.BlockSpec((WCh, WCf), lambda b: (0, 0)),
                pl.BlockSpec((WCh, WCf), lambda b: (0, 0)),
                pl.BlockSpec((WCh, WCf), lambda b: (0, 0)),
                pl.BlockSpec((1, WCh), lambda b: (0, 0)),
                pl.BlockSpec((1, WCf), lambda b: (0, 0)),
            ],
            out_specs=pl.BlockSpec((BH, WCf), lambda b: (b, 0)),
        ),
        # TODO(synk): with batches large enough for >=2 grid steps, consider
        # pltpu.CORE_PARALLEL on this axis so both v7x TensorCores get work.
        compiler_params=pltpu.CompilerParams(dimension_semantics=("parallel",)),
    )(x_cat, w1id, m2p, m2c, m2n, b1w, b2w)

    # lane-dense slab (B*H, W*Cf) -> NHWC; memory already contiguous.
    return out.reshape(B, H, W, Cf)


# ----------------------------- pure-JAX reference -----------------------------
def _conv_nhwc(x, w, stride=1):
    return lax.conv_general_dilated(
        x, w, (stride, stride), "SAME",
        dimension_numbers=("NHWC", "HWIO", "NHWC"))


def _bn(x, g, b, m, v, eps=1e-5):
    return g * (x - m) / jnp.sqrt(v + eps) + b


def resblock_ref(x, w1, bn1, w2, bn2, wid, bnid):
    h = jax.nn.relu(_bn(_conv_nhwc(x, w1), *bn1))
    h = _bn(_conv_nhwc(h, w2), *bn2)
    i = _bn(_conv_nhwc(x, wid), *bnid)
    return jax.nn.relu(h + i)


def _fold_bn(w, bn, eps=1e-5):
    g, b, m, v = bn
    scale = g / jnp.sqrt(v + eps)
    return w * scale, (b - m * scale)[None, :]  # folded weight, (1, C) bias


if __name__ == "__main__":
    B, H, W = 2, 16, 16
    Cin, Ch, Cf = 4, 8, 8  # ni*expansion=4, nh=8, nf=nh*expansion=8

    key = jax.random.PRNGKey(0)
    ks = jax.random.split(key, 16)

    x = jax.random.normal(ks[0], (B, Cin, H, W), jnp.float32)        # NCHW input
    x_nhwc = jnp.transpose(x, (0, 2, 3, 1))                          # -> NHWC

    # conv weights (HWIO), bias-free as in the PyTorch module
    w1_raw = 0.1 * jax.random.normal(ks[1], (3, 3, Cin, Ch), jnp.float32)
    w2_raw = 0.1 * jax.random.normal(ks[2], (3, 3, Ch, Cf), jnp.float32)
    wid_raw = 0.1 * jax.random.normal(ks[3], (1, 1, Cin, Cf), jnp.float32)

    def make_bn(k, c):
        k1, k2, k3, k4 = jax.random.split(k, 4)
        g = 1.0 + 0.1 * jax.random.normal(k1, (c,), jnp.float32)
        b = 0.1 * jax.random.normal(k2, (c,), jnp.float32)
        m = 0.1 * jax.random.normal(k3, (c,), jnp.float32)
        v = 0.5 + jnp.abs(jax.random.normal(k4, (c,), jnp.float32)) * 0.1
        return (g, b, m, v)

    bn1 = make_bn(ks[4], Ch)
    bn2 = make_bn(ks[5], Cf)
    bnid = make_bn(ks[6], Cf)

    # Fold BN (eval mode) into conv weights / per-channel biases
    w1_f, b1_f = _fold_bn(w1_raw, bn1)
    w2_f, b2_f = _fold_bn(w2_raw, bn2)
    wid_f, bid_f = _fold_bn(wid_raw, bnid)
    wid_f2d = wid_f.reshape(Cin, Cf)

    out_pallas = resblock_pallas(x_nhwc, w1_f, b1_f, w2_f, b2_f, wid_f2d, bid_f)
    out_pallas = jax.block_until_ready(out_pallas)

    out_ref = resblock_ref(x_nhwc, w1_raw, bn1, w2_raw, bn2, wid_raw, bnid)
    out_ref = jax.block_until_ready(out_ref)

    assert out_pallas.shape == (B, H, W, Cf)
    # Tolerance loosened vs. a pure-f32 path because matmul operands are cast
    # to bf16 (accumulation stays f32).
    assert jnp.allclose(out_pallas, out_ref, atol=5e-2, rtol=5e-2), (
        float(jnp.max(jnp.abs(out_pallas - out_ref))))

    print("KERNEL_OK")
</pallas_src>

<mosaic_0001>
module attributes {stable_mosaic.version = 11 : i64} {
  func.func @kernel(%arg0: i32, %arg1: memref<32x192xbf16, #tpu.memory_space<vmem>>, %arg2: memref<192x256xbf16, #tpu.memory_space<vmem>>, %arg3: memref<128x128xbf16, #tpu.memory_space<vmem>>, %arg4: memref<128x128xbf16, #tpu.memory_space<vmem>>, %arg5: memref<128x128xbf16, #tpu.memory_space<vmem>>, %arg6: memref<1x128xf32, #tpu.memory_space<vmem>>, %arg7: memref<1x128xf32, #tpu.memory_space<vmem>>, %arg8: memref<32x128xf32, #tpu.memory_space<vmem>>) attributes {dimension_semantics = [#tpu.dimension_semantics<parallel>], iteration_bounds = array<i64: 1>, scalar_prefetch = 0 : i64, scratch_operands = 0 : i64, tpu.core_type = #tpu.core_type<tc>, window_params = [{transform_indices = @transform_0, window_bounds = array<i64: 32, 192>}, {pipeline_mode = #tpu.pipeline_mode<synchronous>, transform_indices = @transform_1, window_bounds = array<i64: 192, 256>}, {pipeline_mode = #tpu.pipeline_mode<synchronous>, transform_indices = @transform_2, window_bounds = array<i64: 128, 128>}, {pipeline_mode = #tpu.pipeline_mode<synchronous>, transform_indices = @transform_3, window_bounds = array<i64: 128, 128>}, {pipeline_mode = #tpu.pipeline_mode<synchronous>, transform_indices = @transform_4, window_bounds = array<i64: 128, 128>}, {pipeline_mode = #tpu.pipeline_mode<synchronous>, transform_indices = @transform_5, window_bounds = array<i64: 1, 128>}, {pipeline_mode = #tpu.pipeline_mode<synchronous>, transform_indices = @transform_6, window_bounds = array<i64: 1, 128>}, {transform_indices = @transform_7, window_bounds = array<i64: 32, 128>}]} {
    %c0 = arith.constant 0 : index
    %c0_0 = arith.constant 0 : index
    %0 = vector.load %arg1[%c0, %c0_0] : memref<32x192xbf16, #tpu.memory_space<vmem>>, vector<32x192xbf16>
    %c0_1 = arith.constant 0 : index
    %c0_2 = arith.constant 0 : index
    %1 = vector.load %arg2[%c0_1, %c0_2] : memref<192x256xbf16, #tpu.memory_space<vmem>>, vector<192x256xbf16>
    %cst = arith.constant dense<0.000000e+00> : vector<32x256xf32>
    %2 = tpu.matmul %0, %1, %cst {dimension_numbers = #tpu.dot_dimension_numbers<[1], [0], [0], [1], [0, 0, 1, 1], [], []>} : vector<32x192xbf16>, vector<192x256xbf16>, vector<32x256xf32> -> vector<32x256xf32>
    %3 = vector.extract_strided_slice %2 {offsets = [0, 0], sizes = [32, 128], strides = [1, 1]} : vector<32x256xf32> to vector<32x128xf32>
    %c0_3 = arith.constant 0 : index
    %c0_4 = arith.constant 0 : index
    %4 = vector.load %arg6[%c0_3, %c0_4] : memref<1x128xf32, #tpu.memory_space<vmem>>, vector<1x128xf32>
    %5 = vector.broadcast %4 : vector<1x128xf32> to vector<32x128xf32>
    %6 = arith.addf %3, %5 : vector<32x128xf32>
    %cst_5 = arith.constant 0.000000e+00 : f32
    %7 = vector.broadcast %cst_5 : f32 to vector<32x128xf32>
    %8 = arith.maximumf %6, %7 : vector<32x128xf32>
    %9 = vector.extract_strided_slice %2 {offsets = [0, 128], sizes = [32, 128], strides = [1, 1]} : vector<32x256xf32> to vector<32x128xf32>
    %10 = tpu.iota {dimensions = array<i32: 0>} : vector<32x128xi32>
    %c15_i32 = arith.constant 15 : i32
    %11 = vector.broadcast %c15_i32 : i32 to vector<32x128xi32>
    %12 = arith.andi %10, %11 : vector<32x128xi32>
    %cst_6 = arith.constant 0.000000e+00 : f32
    %13 = vector.broadcast %cst_6 : f32 to vector<32x128xf32>
    %c0_i32 = arith.constant 0 : i32
    %14 = vector.broadcast %c0_i32 : i32 to vector<32x128xi32>
    %15 = arith.cmpi eq, %12, %14 : vector<32x128xi32>
    %c1_i32 = arith.constant 1 : i32
    %16 = tpu.dynamic_rotate %8 by %c1_i32 dim 0 : vector<32x128xf32>, i32 -> vector<32x128xf32>
    %17 = arith.select %15, %13, %16 : vector<32x128xi1>, vector<32x128xf32>
    %c15_i32_7 = arith.constant 15 : i32
    %18 = vector.broadcast %c15_i32_7 : i32 to vector<32x128xi32>
    %19 = arith.cmpi eq, %12, %18 : vector<32x128xi32>
    %c31_i32 = arith.constant 31 : i32
    %20 = tpu.dynamic_rotate %8 by %c31_i32 dim 0 : vector<32x128xf32>, i32 -> vector<32x128xf32>
    %21 = arith.select %19, %13, %20 : vector<32x128xi1>, vector<32x128xf32>
    %22 = arith.truncf %8 : vector<32x128xf32> to vector<32x128xbf16>
    %c0_8 = arith.constant 0 : index
    %c0_9 = arith.constant 0 : index
    %23 = vector.load %arg4[%c0_8, %c0_9] : memref<128x128xbf16, #tpu.memory_space<vmem>>, vector<128x128xbf16>
    %cst_10 = arith.constant dense<0.000000e+00> : vector<32x128xf32>
    %24 = tpu.matmul %22, %23, %cst_10 {dimension_numbers = #tpu.dot_dimension_numbers<[1], [0], [0], [1], [0, 0, 1, 1], [], []>} : vector<32x128xbf16>, vector<128x128xbf16>, vector<32x128xf32> -> vector<32x128xf32>
    %25 = arith.addf %9, %24 : vector<32x128xf32>
    %26 = arith.truncf %17 : vector<32x128xf32> to vector<32x128xbf16>
    %c0_11 = arith.constant 0 : index
    %c0_12 = arith.constant 0 : index
    %27 = vector.load %arg3[%c0_11, %c0_12] : memref<128x128xbf16, #tpu.memory_space<vmem>>, vector<128x128xbf16>
    %cst_13 = arith.constant dense<0.000000e+00> : vector<32x128xf32>
    %28 = tpu.matmul %26, %27, %cst_13 {dimension_numbers = #tpu.dot_dimension_numbers<[1], [0], [0], [1], [0, 0, 1, 1], [], []>} : vector<32x128xbf16>, vector<128x128xbf16>, vector<32x128xf32> -> vector<32x128xf32>
    %29 = arith.addf %25, %28 : vector<32x128xf32>
    %30 = arith.truncf %21 : vector<32x128xf32> to vector<32x128xbf16>
    %c0_14 = arith.constant 0 : index
    %c0_15 = arith.constant 0 : index
    %31 = vector.load %arg5[%c0_14, %c0_15] : memref<128x128xbf16, #tpu.memory_space<vmem>>, vector<128x128xbf16>
    %cst_16 = arith.constant dense<0.000000e+00> : vector<32x128xf32>
    %32 = tpu.matmul %30, %31, %cst_16 {dimension_numbers = #tpu.dot_dimension_numbers<[1], [0], [0], [1], [0, 0, 1, 1], [], []>} : vector<32x128xbf16>, vector<128x128xbf16>, vector<32x128xf32> -> vector<32x128xf32>
    %33 = arith.addf %29, %32 : vector<32x128xf32>
    %c0_17 = arith.constant 0 : index
    %c0_18 = arith.constant 0 : index
    %34 = vector.load %arg7[%c0_17, %c0_18] : memref<1x128xf32, #tpu.memory_space<vmem>>, vector<1x128xf32>
    %35 = vector.broadcast %34 : vector<1x128xf32> to vector<32x128xf32>
    %36 = arith.addf %33, %35 : vector<32x128xf32>
    %cst_19 = arith.constant 0.000000e+00 : f32
    %37 = vector.broadcast %cst_19 : f32 to vector<32x128xf32>
    %38 = arith.maximumf %36, %37 : vector<32x128xf32>
    %c0_20 = arith.constant 0 : index
    %c0_21 = arith.constant 0 : index
    %39 = vector.load %arg8[%c0_20, %c0_21] : memref<32x128xf32, #tpu.memory_space<vmem>>, vector<32x128xf32>
    tpu.vector_store %arg8[%c0_20, %c0_21], %38 {strides = array<i32>} : memref<32x128xf32, #tpu.memory_space<vmem>>, vector<32x128xf32>,
    return
  }
  func.func @transform_0(%arg0: i32) -> (i32, i32) {
    %c0_i32 = arith.constant 0 : i32
    %c0_i32_0 = arith.constant 0 : i32
    return %arg0, %c0_i32 : i32, i32
  }
  func.func @transform_1(%arg0: i32) -> (i32, i32) {
    %c0_i32 = arith.constant 0 : i32
    %c0_i32_0 = arith.constant 0 : i32
    %c0_i32_1 = arith.constant 0 : i32
    return %c0_i32, %c0_i32_0 : i32, i32
  }
  func.func @transform_2(%arg0: i32) -> (i32, i32) {
    %c0_i32 = arith.constant 0 : i32
    %c0_i32_0 = arith.constant 0 : i32
    %c0_i32_1 = arith.constant 0 : i32
    return %c0_i32, %c0_i32_0 : i32, i32
  }
  func.func @transform_3(%arg0: i32) -> (i32, i32) {
    %c0_i32 = arith.constant 0 : i32
    %c0_i32_0 = arith.constant 0 : i32
    %c0_i32_1 = arith.constant 0 : i32
    return %c0_i32, %c0_i32_0 : i32, i32
  }
  func.func @transform_4(%arg0: i32) -> (i32, i32) {
    %c0_i32 = arith.constant 0 : i32
    %c0_i32_0 = arith.constant 0 : i32
    %c0_i32_1 = arith.constant 0 : i32
    return %c0_i32, %c0_i32_0 : i32, i32
  }
  func.func @transform_5(%arg0: i32) -> (i32, i32) {
    %c0_i32 = arith.constant 0 : i32
    %c0_i32_0 = arith.constant 0 : i32
    %c0_i32_1 = arith.constant 0 : i32
    return %c0_i32, %c0_i32_0 : i32, i32
  }
  func.func @transform_6(%arg0: i32) -> (i32, i32) {
    %c0_i32 = arith.constant 0 : i32
    %c0_i32_0 = arith.constant 0 : i32
    %c0_i32_1 = arith.constant 0 : i32
    return %c0_i32, %c0_i32_0 : i32, i32
  }
  func.func @transform_7(%arg0: i32) -> (i32, i32) {
    %c0_i32 = arith.constant 0 : i32
    %c0_i32_0 = arith.constant 0 : i32
    return %arg0, %c0_i32 : i32, i32
  }
}

</mosaic_0001>

<bundles_post_ra>
// kernel: resblock_pallas.1
= control target key start
LH: loop header
LB: loop body
LE: loop exit
PB: predicated region body
PF: predicated region fallthrough
CT: control target
= control target key end

     0   :  { %vm193_vm0 = vcmask 523264   ;;  %v268_v45 = vlaneseq  ;;  %vm924_vm4 = vmmov 1   ;;  %s1194_s1 = inlined_call_operand.vmem [shape: bf16[192,256], index: 1, kind: input, shape index: {}]   ;;  %s1195_s0 = inlined_call_operand.vmem [shape: bf16[32,192], index: 0, kind: input, shape index: {}]   ;;  %s1196_s3 = inlined_call_operand.vmem [shape: bf16[128,128], index: 3, kind: input, shape index: {}]   ;;  %s1197_s4 = inlined_call_operand.vmem [shape: bf16[128,128], index: 4, kind: input, shape index: {}]   ;;  %s1198_s2 = inlined_call_operand.vmem [shape: bf16[128,128], index: 2, kind: input, shape index: {}]   ;;  %s1199_s5 = inlined_call_operand.vmem [shape: f32[1,128], index: 5, kind: input, shape index: {}]   ;;  %s1200_s6 = inlined_call_operand.vmem [shape: f32[1,128], index: 6, kind: input, shape index: {}]   ;;  %s1201_s7 = inlined_call_operand.vmem [shape: f32[32,128], index: 7, kind: output, shape index: {}]  }
   0x1   :  { %v858_v0 = vld [vmem:[%s1194_s1 + $0x74] ss:$8 sps:$4 sm:$0xff]   ;;  %v860_v1 = vld [vmem:[%s1194_s1 + $0x70] ss:$8 sps:$4 sm:$0xff]   ;;  %v861_v2 = vld [vmem:[%s1194_s1 + $0x64] ss:$8 sps:$4 sm:$0xff]  }
   0x2   :  { %200 = vmatprep.subr.bf16.mxu0 %v858_v0  ;;  %v863_v3 = vld [vmem:[%s1194_s1 + $0x60] ss:$8 sps:$4 sm:$0xff]   ;;  %v864_v4 = vld [vmem:[%s1194_s1 + $0x54] ss:$8 sps:$4 sm:$0xff]   ;;  %v866_v5 = vld [vmem:[%s1194_s1 + $0x50] ss:$8 sps:$4 sm:$0xff]  }
   0x3   :  { %201 = vmatpush1.bf16.msra.mxu0 %v860_v1  ;;  %v867_v6 = vld [vmem:[%s1194_s1 + $0x44] ss:$8 sps:$4 sm:$0xff]   ;;  %v869_v7 = vld [vmem:[%s1194_s1 + $0x40] ss:$8 sps:$4 sm:$0xff]   ;;  %v870_v8 = vld [vmem:[%s1194_s1 + $0x34] ss:$8 sps:$4 sm:$0xff]  }
   0x4   :  { %202 = vmatprep.subr.bf16.mxu0 %v861_v2  ;;  %v872_v9 = vld [vmem:[%s1194_s1 + $0x30] ss:$8 sps:$4 sm:$0xff]   ;;  %v873_v10 = vld [vmem:[%s1194_s1 + $0x24] ss:$8 sps:$4 sm:$0xff]   ;;  %v875_v12 = vld [vmem:[%s1194_s1 + $0x20] ss:$8 sps:$4 sm:$0xff]  }
   0x5   :  { %v896_v11 = vld [vmem:[%s1195_s0 + $0x4] ss:$8 sps:$4 sm:$0xff]   ;;  %v876_v13 = vld [vmem:[%s1194_s1 + $0x14] ss:$8 sps:$4 sm:$0xff]   ;;  %v878_v16 = vld [vmem:[%s1194_s1 + $0x10] ss:$8 sps:$4 sm:$0xff]  }
   0x6   :  { %719 = vmatprep.mubr.msk.bf16.mxu0 %vm193_vm0, %v896_v11  ;;  %v900_v14 = vld [vmem:[%s1196_s3 + $0x38] sm:$0xff]   ;;  %v901_v15 = vld [vmem:[%s1196_s3 + $0x30] sm:$0xff]   ;;  %v903_v17 = vld [vmem:[%s1196_s3 + $0x28] sm:$0xff]   ;;  %v1107_v49 = vshrl.u32 %v268_v45, 7 }
   0x7   :  { %203 = vmatpush1.bf16.msra.mxu0 %v863_v3  ;;  %797 = vmatprep.subr.bf16.mxu1 %v900_v14  ;;  %v879_v18 = vld [vmem:[%s1194_s1 + $0x4] ss:$8 sps:$4 sm:$0xff]   ;;  %v881_v19 = vld [vmem:[%s1194_s1] ss:$8 sps:$4 sm:$0xff]   ;;  %v882_v21 = vld [vmem:[%s1194_s1 + $0xb4] ss:$8 sps:$4 sm:$0xff]  }
   0x8   :  { %204 = vmatprep.subr.bf16.mxu0 %v864_v4  ;;  %798 = vmatpush3.bf16.msra.mxu1 %v900_v14  ;;  %v905_v20 = vld [vmem:[%s1196_s3 + $0x20] sm:$0xff]   ;;  %v884_v22 = vld [vmem:[%s1194_s1 + $0xb0] ss:$8 sps:$4 sm:$0xff]   ;;  %v888_v25 = vld [vmem:[%s1194_s1 + $0x94] ss:$8 sps:$4 sm:$0xff]   ;;  %v270_v52 = vadd.s32 8, %v1107_v49 }
   0x9   :  { %799 = vmatprep.subr.bf16.mxu1 %v901_v15  ;;  %v885_v23 = vld [vmem:[%s1194_s1 + $0xa4] ss:$8 sps:$4 sm:$0xff]   ;;  %v887_v24 = vld [vmem:[%s1194_s1 + $0xa0] ss:$8 sps:$4 sm:$0xff]   ;;  %v890_v26 = vld [vmem:[%s1194_s1 + $0x90] ss:$8 sps:$4 sm:$0xff]  }
   0xa   :  { %v891_v27 = vld [vmem:[%s1194_s1 + $0x84] ss:$8 sps:$4 sm:$0xff]   ;;  %v893_v28 = vld [vmem:[%s1194_s1 + $0x80] ss:$8 sps:$4 sm:$0xff]   ;;  %v902_v29 = vld [vmem:[%s1197_s4 + $0x38] sm:$0xff]   ;;  %v274_v58 = vand.u32 15, %v270_v52 }
   0xb   :  { %205 = vmatpush1.bf16.msra.mxu0 %v866_v5  ;;  %v894_v30 = vld [vmem:[%s1195_s0] ss:$8 sps:$4 sm:$0xff]   ;;  %v897_v31 = vld [vmem:[%s1195_s0 + $0x14] ss:$8 sps:$4 sm:$0xff]   ;;  %v899_v34 = vld [vmem:[%s1195_s0 + $0x10] ss:$8 sps:$4 sm:$0xff]  }
   0xc   :  { %206 = vmatprep.subr.bf16.mxu0 %v867_v6  ;;  %800 = vmatpush3.bf16.msra.mxu1 %v901_v15  ;;  %v904_v32 = vld [vmem:[%s1197_s4 + $0x30] sm:$0xff]   ;;  %v906_v33 = vld [vmem:[%s1197_s4 + $0x28] sm:$0xff]   ;;  %v907_v35 = vld [vmem:[%s1196_s3 + $0x18] sm:$0xff]   ;;  %v272_v59 = vadd.s32 24, %v1107_v49  ;;  %v273_v63 = vand.u32 15, %v1107_v49  ;;  %vm302_vm1 = vcmp.lt.s32.totalorder %v1107_v49, 7 }
   0xd   :  { %801 = vmatprep.subr.bf16.mxu1 %v903_v17  ;;  %v908_v36 = vld [vmem:[%s1197_s4 + $0x20] sm:$0xff]   ;;  %v909_v37 = vld [vmem:[%s1196_s3 + $0x10] sm:$0xff]   ;;  %v910_v38 = vld [vmem:[%s1197_s4 + $0x18] sm:$0xff]   ;;  %vm765_vm2 = vcmp.ne.s32.totalorder %v274_v58, 15  ;;  %vm285_vm6 = vcmp.lt.s32.totalorder %v1107_v49, 1 }
   0xe   :  { %v911_v39 = vld [vmem:[%s1196_s3 + $0x8] sm:$0xff]   ;;  %v912_v40 = vld [vmem:[%s1197_s4 + $0x10] sm:$0xff]   ;;  %v913_v41 = vld [vmem:[%s1196_s3] sm:$0xff]   ;;  %v276_v3 = vand.u32 15, %v272_v59  ;;  %vm1124_vm3 = vcmp.ne.s32.totalorder %v273_v63, 0 }
   0xf   :  { %207 = vmatpush1.bf16.msra.mxu0 %v869_v7  ;;  %v914_v42 = vld [vmem:[%s1197_s4 + $0x8] sm:$0xff]   ;;  %v915_v43 = vld [vmem:[%s1198_s2 + $0x38] sm:$0xff]   ;;  %v916_v44 = vld [vmem:[%s1197_s4] sm:$0xff]  }
  0x10   :  { %208 = vmatprep.subr.bf16.mxu0 %v870_v8  ;;  %802 = vmatpush3.bf16.msra.mxu1 %v903_v17  ;;  %v721_v47 = vld [vmem:[%s1199_s5] ss:$0 sm:$0xff]  ;;  %vm755_vm5 = vmpackc.low %vm765_vm2, %vm924_vm4  ;;  %vm766_vm7 = vcmp.ne.s32.totalorder %v276_v3, 15  ;;  %v917_v17 = vld [vmem:[%s1198_s2 + $0x30] sm:$0xff]  }
  0x11   :  { %803 = vmatprep.subr.bf16.mxu1 %v905_v20  ;;  %vm739_vm8 = vmpackc.low %vm924_vm4, %vm1124_vm3 }
  0x12   :  { %vm759_vm9 = vmpackc.low %vm766_vm7, %vm924_vm4 }
  0x13   :  { %209 = vmatpush1.bf16.msra.mxu0 %v872_v9 }
  0x14   :  { %210 = vmatprep.subr.bf16.mxu0 %v873_v10  ;;  %804 = vmatpush3.bf16.msra.mxu1 %v905_v20 }
  0x15   :  { %805 = vmatprep.subr.bf16.mxu1 %v907_v35 }
  0x17   :  { %211 = vmatpush1.bf16.msra.mxu0 %v875_v12 }
  0x18   :  { %212 = vmatprep.subr.bf16.mxu0 %v876_v13  ;;  %806 = vmatpush3.bf16.msra.mxu1 %v907_v35 }
  0x19   :  { %807 = vmatprep.subr.bf16.mxu1 %v909_v37 }
  0x1b   :  { %213 = vmatpush1.bf16.msra.mxu0 %v878_v16 }
  0x1c   :  { %214 = vmatprep.subr.bf16.mxu0 %v879_v18  ;;  %808 = vmatpush3.bf16.msra.mxu1 %v909_v37 }
  0x1d   :  { %809 = vmatprep.subr.bf16.mxu1 %v911_v39 }
  0x1f   :  { %215 = vmatpush1.bf16.msra.mxu0 %v881_v19 }
  0x20   :  { %224 = vmatprep.subr.bf16.mxu0 %v882_v21  ;;  %810 = vmatpush3.bf16.msra.mxu1 %v911_v39 }
  0x21   :  { %811 = vmatprep.subr.bf16.mxu1 %v913_v41 }
  0x23   :  { %225 = vmatpush2.bf16.msra.mxu0 %v884_v22 }
  0x24   :  { %226 = vmatprep.subr.bf16.mxu0 %v885_v23  ;;  %812 = vmatpush3.bf16.msra.mxu1 %v913_v41 }
  0x25   :  { %817 = vmatprep.subr.bf16.mxu1 %v915_v43 }
  0x27   :  { %227 = vmatpush2.bf16.msra.mxu0 %v887_v24  ;;  %v918_v24 = vld [vmem:[%s1198_s2 + $0x28] sm:$0xff]  }
  0x28   :  { %228 = vmatprep.subr.bf16.mxu0 %v888_v25  ;;  %v919_v25 = vld [vmem:[%s1198_s2 + $0x20] sm:$0xff]  }
  0x2b   :  { %229 = vmatpush2.bf16.msra.mxu0 %v890_v26  ;;  %v920_v26 = vld [vmem:[%s1198_s2 + $0x18] sm:$0xff]  }
  0x2c   :  { %230 = vmatprep.subr.bf16.mxu0 %v891_v27  ;;  %v921_v27 = vld [vmem:[%s1198_s2 + $0x10] sm:$0xff]  }
  0x2f   :  { %231 = vmatpush2.bf16.msra.mxu0 %v893_v28  ;;  %v922_v28 = vld [vmem:[%s1198_s2 + $0x8] sm:$0xff]  }
  0x30   :  { %837 = vmatprep.subr.bf16.mxu0 %v902_v29 }
  0x32   :  { %233 = vmatmul.mubr.bf16.vlgmr.msra.gmra.mxu0 %v894_v30  ;;  %v923_v30 = vld [vmem:[%s1198_s2] sm:$0xff]  }
  0x33   :  { %720 = vmatprep.mubr.msk.bf16.mxu0 %vm193_vm0, %v897_v31  ;;  %838 = vmatpush3.bf16.msra.mxu0 %v902_v29  ;;  %v271_v29 = vadd.s32 16, %v1107_v49 }
  0x34   :  { %839 = vmatprep.subr.bf16.mxu0 %v904_v32 }
  0x35   :  { %v275_v31 = vand.u32 15, %v271_v29 }
  0x37   :  { %840 = vmatpush3.bf16.msra.mxu0 %v904_v32  ;;  %vm764_vm10 = vcmp.ne.s32.totalorder %v275_v31, 0 }
  0x38   :  { %841 = vmatprep.subr.bf16.mxu0 %v906_v33  ;;  %vm743_vm11 = vmpackc.low %vm924_vm4, %vm764_vm10 }
  0x3a   :  { %243 = vmatmul.mubr.bf16.gmra.mxu0 %v899_v34 }
  0x3b   :  { %842 = vmatpush3.bf16.msra.mxu0 %v906_v33 }
  0x3c   :  { %843 = vmatprep.subr.bf16.mxu0 %v908_v36 }
  0x3f   :  { %844 = vmatpush3.bf16.msra.mxu0 %v908_v36 }
  0x40   :  { %845 = vmatprep.subr.bf16.mxu0 %v910_v38 }
  0x43   :  { %846 = vmatpush3.bf16.msra.mxu0 %v910_v38 }
  0x44   :  { %847 = vmatprep.subr.bf16.mxu0 %v912_v40 }
  0x47   :  { %848 = vmatpush3.bf16.msra.mxu0 %v912_v40 }
  0x48   :  { %849 = vmatprep.subr.bf16.mxu0 %v914_v42 }
  0x4b   :  { %850 = vmatpush3.bf16.msra.mxu0 %v914_v42 }
  0x4c   :  { %851 = vmatprep.subr.bf16.mxu0 %v916_v44 }
  0x4f   :  { %852 = vmatpush3.bf16.msra.mxu0 %v916_v44 }
  0xf2   :  { %v234_v46 = vpop.f32.mrf.mxu0 }
  0xf3   :  { %v260_v50 = vadd.f32 %v721_v47, %v234_v46 }
  0xf4   :  { %v1105_v48 = vpop.f32.mrf.mxu0 }
  0xf5   :  { %v264_v55 = vmax.f32 %v260_v50, 0.0 }
  0xf6   :  { %v238_v51 = vpop.f32.mrf.mxu0 }
  0xf7   :  { %v261_v53 = vadd.f32 %v721_v47, %v238_v51  ;;  %v298_v4 = vrot.slane %v264_v55, 1  ;;  %v281_v13 = vrot.slane %v264_v55, 7 }
  0xf8   :  { %v1110_v54 = vpop.f32.mrf.mxu0 }
  0xf9   :  { %v1112_v56 = vmax.f32 %v261_v53, 0.0 }
  0xfa   :  { %v244_v57 = vpop.f32.mrf.mxu0 }
  0xfb   :  { %v262_v60 = vadd.f32 %v721_v47, %v244_v57  ;;  %v311_v61 = vpack.c.bf16 %v1112_v56, %v264_v55  ;;  %v299_v0 = vrot.slane %v1112_v56, 1  ;;  %v282_v8 = vrot.slane %v1112_v56, 7 }
  0xfc   :  { %v1116_v62 = vpop.f32.mrf.mxu0 }
  0xfd   :  { %v1120_v1 = vmax.f32 %v262_v60, 0.0  ;;  %813 = vmatprep.mubr.bf16.mxu1 %v311_v61  ;;  %v305_v11 = vsel %vm302_vm1, %v298_v4, %v299_v0  ;;  %v288_v20 = vsel %vm285_vm6, %v281_v13, %v282_v8 }
  0xfe   :  { %v248_v2 = vpop.f32.mrf.mxu0 }
  0xff   :  { %v300_v5 = vrot.slane %v1120_v1, 1  ;;  %v263_v6 = vadd.f32 %v721_v47, %v248_v2  ;;  %v283_v32 = vrot.slane %v1120_v1, 7  ;;  %v762_v47 = vld [vmem:[%s1200_s6] ss:$0 sm:$0xff] }
 0x100   :  { %v250_v38 = vpop.f32.mrf.mxu0 }
 0x101   :  { %v267_v9 = vmax.f32 %v263_v6, 0.0  ;;  %v304_v10 = vsel %vm302_vm1, %v299_v0, %v300_v5  ;;  %v287_v34 = vsel %vm285_vm6, %v282_v8, %v283_v32 }
 0x102   :  { %v756_v12 = vpack.c.bf16 %v304_v10, %v305_v11 }
 0x103   :  { %v284_v14 = vrot.slane %v267_v9, 7  ;;  %v301_v15 = vrot.slane %v267_v9, 1  ;;  %v312_v16 = vpack.c.bf16 %v267_v9, %v1120_v1 }
 0x104   :  { %853 = vmatprep.mubr.msk.bf16.mxu0 %vm755_vm5, %v756_v12 }
 0x105   :  { %v303_v18 = vsel %vm302_vm1, %v300_v5, %v301_v15  ;;  %v306_v19 = vsel %vm302_vm1, %v301_v15, %v298_v4  ;;  %814 = vmatmul.mubr.bf16.vlgmr.msra.gmra.mxu1 %v312_v16  ;;  %v289_v21 = vsel %vm285_vm6, %v284_v14, %v281_v13  ;;  %v286_v33 = vsel %vm285_vm6, %v283_v32, %v284_v14 }
 0x106   :  { %v760_v22 = vpack.c.bf16 %v306_v19, %v303_v18  ;;  %818 = vmatpush3.bf16.msra.mxu1 %v915_v43  ;;  %v740_v23 = vpack.c.bf16 %v288_v20, %v289_v21  ;;  %v744_v35 = vpack.c.bf16 %v286_v33, %v287_v34 }
 0x107   :  { %819 = vmatprep.subr.bf16.mxu1 %v917_v17 }
 0x108   :  { %833 = vmatprep.mubr.msk.bf16.mxu1 %vm739_vm8, %v740_v23  ;;  %854 = vmatmul.mubr.msk.bf16.vlgmr.msra.gmra.mxu0 %vm759_vm9, %v760_v22 }
 0x10a   :  { %820 = vmatpush3.bf16.msra.mxu1 %v917_v17 }
 0x10b   :  { %821 = vmatprep.subr.bf16.mxu1 %v918_v24 }
 0x10e   :  { %822 = vmatpush3.bf16.msra.mxu1 %v918_v24 }
 0x10f   :  { %823 = vmatprep.subr.bf16.mxu1 %v919_v25 }
 0x112   :  { %824 = vmatpush3.bf16.msra.mxu1 %v919_v25 }
 0x113   :  { %825 = vmatprep.subr.bf16.mxu1 %v920_v26 }
 0x116   :  { %826 = vmatpush3.bf16.msra.mxu1 %v920_v26 }
 0x117   :  { %827 = vmatprep.subr.bf16.mxu1 %v921_v27 }
 0x11a   :  { %828 = vmatpush3.bf16.msra.mxu1 %v921_v27 }
 0x11b   :  { %829 = vmatprep.subr.bf16.mxu1 %v922_v28 }
 0x11e   :  { %830 = vmatpush3.bf16.msra.mxu1 %v922_v28 }
 0x11f   :  { %831 = vmatprep.subr.bf16.mxu1 %v923_v30 }
 0x122   :  { %832 = vmatpush3.bf16.msra.mxu1 %v923_v30 }
 0x125   :  { %834 = vmatmul.mubr.msk.bf16.vlgmr.msra.gmra.mxu1 %vm743_vm11, %v744_v35 }
 0x1c5   :  { %v815_v36 = vpop.f32.mrf.mxu1 }
 0x1c6   :  { %v428_v42 = vadd.f32 %v815_v36, %v1116_v62 }
 0x1c7   :  { %v411_v37 = vpop.f32.mrf.mxu1 }
 0x1c8   :  { %v855_v40 = vpop.f32.mrf.mxu0  ;;  %v426_v45 = vadd.f32 %v411_v37, %v1105_v48 }
 0x1c9   :  { %v816_v39 = vpop.f32.mrf.mxu1 }
 0x1ca   :  { %v649_v43 = vpop.f32.mrf.mxu0  ;;  %v429_v50 = vadd.f32 %v816_v39, %v250_v38 }
 0x1cb   :  { %v414_v41 = vpop.f32.mrf.mxu1 }
 0x1cc   :  { %v856_v53 = vpop.f32.mrf.mxu0  ;;  %v427_v56 = vadd.f32 %v414_v41, %v1110_v54 }
 0x1ce   :  { %v652_v0 = vpop.f32.mrf.mxu0 }
 0x1e5   :  { %v835_v44 = vpop.f32.mrf.mxu1 }
 0x1e6   :  { %v547_v46 = vadd.f32 %v835_v44, %v428_v42 }
 0x1e7   :  { %v530_v49 = vpop.f32.mrf.mxu1 }
 0x1e8   :  { %v666_v51 = vadd.f32 %v855_v40, %v547_v46  ;;  %v545_v52 = vadd.f32 %v530_v49, %v426_v45 }
 0x1e9   :  { %v836_v55 = vpop.f32.mrf.mxu1 }
 0x1ea   :  { %v677_v57 = vadd.f32 %v762_v47, %v666_v51  ;;  %v664_v58 = vadd.f32 %v649_v43, %v545_v52  ;;  %v548_v59 = vadd.f32 %v836_v55, %v429_v50 }
 0x1eb   :  { %v533_v60 = vpop.f32.mrf.mxu1 }
 0x1ec   :  { %v681_v61 = vmax.f32 %v677_v57, 0.0  ;;  %v675_v62 = vadd.f32 %v762_v47, %v664_v58  ;;  %v667_v48 = vadd.f32 %v856_v53, %v548_v59  ;;  %v546_v63 = vadd.f32 %v533_v60, %v427_v56 }
 0x1ee   :  { %685 = vst [vmem:[%s1201_s7 + $0x10] sm:$0xff] %v681_v61  ;;  %v679_v1 = vmax.f32 %v675_v62, 0.0  ;;  %v678_v2 = vadd.f32 %v762_v47, %v667_v48  ;;  %v665_v3 = vadd.f32 %v652_v0, %v546_v63 }
 0x1f0   :  { %683 = vst [vmem:[%s1201_s7] sm:$0xff] %v679_v1  ;;  %v682_v54 = vmax.f32 %v678_v2, 0.0  ;;  %v676_v4 = vadd.f32 %v762_v47, %v665_v3 }
 0x1f2   :  { %686 = vst [vmem:[%s1201_s7 + $0x18] sm:$0xff] %v682_v54  ;;  %v680_v5 = vmax.f32 %v676_v4, 0.0 }
 0x1f4   :  { %684 = vst [vmem:[%s1201_s7 + $0x8] sm:$0xff] %v680_v5 }

</bundles_post_ra>
